<compile_context>
chip_gen: v6e
topology: v6e:2x2x1
jax: 0.10.0
libtpu: 0.0.40
codegen_flags: <defaults>
</compile_context>

<pallas_src>
import functools

import jax
import jax.numpy as jnp
from jax.experimental import pallas as pl
from jax.experimental.pallas import tpu as pltpu


def _mhsa_kernel(xin_ref, w_all_ref, b_all_ref, wfc_ref, bfc_ref, o_ref,
                 *, n_heads, compute_dtype):
    """One batch element per grid step.

    xin_ref  : (1, 3, S, H)        stacked [query, key, value] for this batch element
    w_all_ref: (3*n_heads, H, Dh)  per-(projection, head) weights; q-part pre-scaled by 1/sqrt(Dh)
    b_all_ref: (3*n_heads, 1, Dh)  per-(projection, head) biases;  q-part pre-scaled
    wfc_ref  : (n_heads, Dh, H)    output projection, split along its input dim per head
    bfc_ref  : (1, H)
    o_ref    : (1, S, H)
    """
    x3 = xin_ref[0]                                   # (3, S, H)
    _, S, H = x3.shape
    Dh = H // n_heads

    # Replicate q/k/v along a leading (untiled) heads dim so every projection for
    # every head is a single batched MXU sequence (one dot_general, batch = 3*n_heads).
    xg = jnp.broadcast_to(x3[:, None], (3, n_heads, S, H)).reshape(3 * n_heads, S, H)
    xg = xg.astype(compute_dtype)
    w_all = w_all_ref[...].astype(compute_dtype)

    qkv = jnp.einsum("gsh,ghd->gsd", xg, w_all,
                     preferred_element_type=jnp.float32)
    qkv = qkv + b_all_ref[...]                        # (3*n_heads, S, Dh), f32

    Qh = qkv[0 * n_heads:1 * n_heads]                 # (n_heads, S, Dh); already / sqrt(Dh)
    Kh = qkv[1 * n_heads:2 * n_heads]
    Vh = qkv[2 * n_heads:3 * n_heads]

    # Batched QK^T over heads; both operands contract on their LAST dim, so no
    # explicit K transpose (no XLU vxpose) is materialized.
    energy = jnp.einsum("hqd,hkd->hqk",
                        Qh.astype(compute_dtype), Kh.astype(compute_dtype),
                        preferred_element_type=jnp.float32)   # (n_heads, S, S)

    # Numerically-stable softmax in f32; denominator via the approximate (EUP)
    # reciprocal so the divide stays off the VPU.
    energy = energy - jnp.max(energy, axis=-1, keepdims=True)
    p = jnp.exp(energy)
    attn = p * pl.reciprocal(jnp.sum(p, axis=-1, keepdims=True), approx=True)
    # TODO(synk): nn.Dropout(attention) is identity in eval mode; training-mode dropout
    # (pltpu.prng_seed + prng_random_bits mask) intentionally not applied here.

    ctx = jnp.einsum("hqk,hkd->hqd",
                     attn.astype(compute_dtype), Vh.astype(compute_dtype),
                     preferred_element_type=jnp.float32)      # (n_heads, S, Dh)

    # Head-concat + fc  ==  sum_h ctx[h] @ wfc[h] : one batched matmul followed by a
    # leading-dim sum (elementwise adds) — no lane-dim concatenate / relayout.
    wfc = wfc_ref[...].astype(compute_dtype)
    out = jnp.einsum("hsd,hdo->hso", ctx.astype(compute_dtype), wfc,
                     preferred_element_type=jnp.float32)      # (n_heads, S, H)
    out = jnp.sum(out, axis=0) + bfc_ref[...]                 # (S, H)

    o_ref[0] = out.astype(o_ref.dtype)


def mhsa_forward(query, key, value, params, *, n_heads, compute_dtype=jnp.float32):
    """query/key/value: (B, S, H) float32. params: (in,out) weights, (1,H) biases."""
    B, S, H = query.shape
    assert H % n_heads == 0
    Dh = H // n_heads
    inv_scale = 1.0 / float(jnp.sqrt(jnp.float32(Dh)))

    # --- wrapper-side (free) weight repacking -------------------------------------
    def per_head(w, b, scale=1.0):
        # w: (H_in, H_out) -> (n_heads, H_in, Dh);  b: (1, H_out) -> (n_heads, 1, Dh)
        w_h = (w * scale).reshape(H, n_heads, Dh).transpose(1, 0, 2)
        b_h = (b * scale).reshape(n_heads, Dh)[:, None, :]
        return w_h, b_h

    wq_h, bq_h = per_head(params["wq"], params["bq"], inv_scale)  # fold 1/sqrt(Dh) into Q
    wk_h, bk_h = per_head(params["wk"], params["bk"])
    wv_h, bv_h = per_head(params["wv"], params["bv"])
    w_all = jnp.concatenate([wq_h, wk_h, wv_h], axis=0)           # (3*n_heads, H, Dh)
    b_all = jnp.concatenate([bq_h, bk_h, bv_h], axis=0).astype(jnp.float32)
    wfc_h = params["wfc"].reshape(n_heads, Dh, H)                 # (n_heads, Dh, H)
    bfc = params["bfc"].astype(jnp.float32)                       # (1, H)

    # Stack q/k/v so each grid step reads one (1, 3, S, H) activation block.
    xin = jnp.stack([query, key, value], axis=1)                  # (B, 3, S, H)

    kernel = functools.partial(_mhsa_kernel, n_heads=n_heads, compute_dtype=compute_dtype)

    # FLOPs: 3 projections + QK^T + attn@V + fc, per batch element.
    flops = 2 * B * (3 * S * H * H + 2 * S * S * H + S * H * H)
    bytes_accessed = 4 * (xin.size + w_all.size + b_all.size + wfc_h.size + bfc.size
                          + B * S * H)

    return pl.pallas_call(
        kernel,
        out_shape=jax.ShapeDtypeStruct((B, S, H), query.dtype),
        grid_spec=pltpu.PrefetchScalarGridSpec(
            num_scalar_prefetch=0,
            grid=(B,),
            in_specs=[
                pl.BlockSpec((1, 3, S, H), lambda b: (b, 0, 0, 0)),
                pl.BlockSpec((3 * n_heads, H, Dh), lambda b: (0, 0, 0)),
                pl.BlockSpec((3 * n_heads, 1, Dh), lambda b: (0, 0, 0)),
                pl.BlockSpec((n_heads, Dh, H), lambda b: (0, 0, 0)),
                pl.BlockSpec((1, H), lambda b: (0, 0)),
            ],
            out_specs=pl.BlockSpec((1, S, H), lambda b: (b, 0, 0)),
        ),
        compiler_params=pltpu.CompilerParams(dimension_semantics=("parallel",)),
        cost_estimate=pl.CostEstimate(
            flops=flops,
            transcendentals=B * n_heads * S * S,
            bytes_accessed=bytes_accessed,
        ),
    )(xin, w_all, b_all, wfc_h, bfc)


def _reference(query, key, value, params, *, n_heads):
    """Pure-JAX reference matching the PyTorch forward (eval mode, no mask)."""
    B, S, H = query.shape
    Dh = H // n_heads
    scale = jnp.sqrt(jnp.float32(Dh))

    def lin(x, w, b):
        return x @ w + b  # w already (in, out)

    Q = lin(query, params["wq"], params["bq"]).reshape(B, S, n_heads, Dh).transpose(0, 2, 1, 3)
    K = lin(key, params["wk"], params["bk"]).reshape(B, S, n_heads, Dh).transpose(0, 2, 1, 3)
    V = lin(value, params["wv"], params["bv"]).reshape(B, S, n_heads, Dh).transpose(0, 2, 1, 3)
    energy = jnp.einsum("bhqd,bhkd->bhqk", Q, K) / scale
    attn = jax.nn.softmax(energy, axis=-1)
    ctx = jnp.einsum("bhqk,bhkd->bhqd", attn, V).transpose(0, 2, 1, 3).reshape(B, S, H)
    return lin(ctx, params["wfc"], params["bfc"])


if __name__ == "__main__":
    # Small shapes consistent with the module: batch=2, seq=8, hidden=32, heads=4.
    B, S, H, n_heads = 2, 8, 32, 4
    drop_prob = 0.1  # unused in eval-mode forward

    key0 = jax.random.PRNGKey(0)
    keys = jax.random.split(key0, 12)

    def init_linear(kw, kb, fan_in):
        bound = 1.0 / jnp.sqrt(jnp.float32(fan_in))
        # PyTorch nn.Linear stores weight as (out, in); transpose to (in, out) for x @ W.
        w = jax.random.uniform(kw, (H, H), jnp.float32, -bound, bound).T
        b = jax.random.uniform(kb, (1, H), jnp.float32, -bound, bound)
        return w, b

    wq, bq = init_linear(keys[0], keys[1], H)
    wk, bk = init_linear(keys[2], keys[3], H)
    wv, bv = init_linear(keys[4], keys[5], H)
    wfc, bfc = init_linear(keys[6], keys[7], H)
    params = dict(wq=wq, bq=bq, wk=wk, bk=bk, wv=wv, bv=bv, wfc=wfc, bfc=bfc)

    query = jax.random.normal(keys[8], (B, S, H), jnp.float32)
    key_in = jax.random.normal(keys[9], (B, S, H), jnp.float32)
    value = jax.random.normal(keys[10], (B, S, H), jnp.float32)

    out = mhsa_forward(query, key_in, value, params, n_heads=n_heads)
    out = jax.block_until_ready(out)

    ref = _reference(query, key_in, value, params, n_heads=n_heads)
    assert out.shape == (B, S, H)
    # Tolerance slightly looser than 1e-4 because the softmax denominator uses the
    # approximate (EUP) reciprocal as requested by the perf review.
    assert jnp.allclose(out, ref, atol=2e-3, rtol=2e-3), "mismatch vs reference"

    print("KERNEL_OK")
</pallas_src>

<mosaic_0001>
module attributes {stable_mosaic.version = 11 : i64} {
  func.func @_mhsa_kernel(%arg0: i32, %arg1: memref<1x3x8x32xf32, #tpu.memory_space<vmem>>, %arg2: memref<12x32x8xf32, #tpu.memory_space<vmem>>, %arg3: memref<12x1x8xf32, #tpu.memory_space<vmem>>, %arg4: memref<4x8x32xf32, #tpu.memory_space<vmem>>, %arg5: memref<1x32xf32, #tpu.memory_space<vmem>>, %arg6: memref<1x8x32xf32, #tpu.memory_space<vmem>>) attributes {dimension_semantics = [#tpu.dimension_semantics<parallel>], iteration_bounds = array<i64: 2>, scalar_prefetch = 0 : i64, scratch_operands = 0 : i64, tpu.core_type = #tpu.core_type<tc>, window_params = [{transform_indices = @transform_0, window_bounds = array<i64: 1, 3, 8, 32>}, {pipeline_mode = #tpu.pipeline_mode<synchronous>, transform_indices = @transform_1, window_bounds = array<i64: 12, 32, 8>}, {pipeline_mode = #tpu.pipeline_mode<synchronous>, transform_indices = @transform_2, window_bounds = array<i64: 12, 1, 8>}, {pipeline_mode = #tpu.pipeline_mode<synchronous>, transform_indices = @transform_3, window_bounds = array<i64: 4, 8, 32>}, {pipeline_mode = #tpu.pipeline_mode<synchronous>, transform_indices = @transform_4, window_bounds = array<i64: 1, 32>}, {transform_indices = @transform_5, window_bounds = array<i64: 1, 8, 32>}]} {
    %c0 = arith.constant 0 : index
    %c0_0 = arith.constant 0 : index
    %c0_1 = arith.constant 0 : index
    %c0_2 = arith.constant 0 : index
    %0 = vector.load %arg1[%c0, %c0_0, %c0_1, %c0_2] : memref<1x3x8x32xf32, #tpu.memory_space<vmem>>, vector<1x3x8x32xf32>
    %1 = vector.shape_cast %0 : vector<1x3x8x32xf32> to vector<3x8x32xf32>
    %2 = vector.shape_cast %1 : vector<3x8x32xf32> to vector<3x1x8x32xf32>
    %3 = vector.shape_cast %2 : vector<3x1x8x32xf32> to vector<3x1x8x32xf32>
    %4 = vector.broadcast %3 : vector<3x1x8x32xf32> to vector<3x4x8x32xf32>
    %5 = vector.shape_cast %4 : vector<3x4x8x32xf32> to vector<12x8x32xf32>
    %c0_3 = arith.constant 0 : index
    %c0_4 = arith.constant 0 : index
    %c0_5 = arith.constant 0 : index
    %6 = vector.load %arg2[%c0_3, %c0_4, %c0_5] : memref<12x32x8xf32, #tpu.memory_space<vmem>>, vector<12x32x8xf32>
    "tpu.trace_start"() <{level = 10 : i32, message = "gsh,ghd->gsd"}> : () -> ()
    %cst = arith.constant dense<0.000000e+00> : vector<12x8x8xf32>
    %7 = tpu.matmul %5, %6, %cst {dimension_numbers = #tpu.dot_dimension_numbers<[2], [1], [1], [2], [0, 0, 0, 1, 1, 2], [0], [0]>} : vector<12x8x32xf32>, vector<12x32x8xf32>, vector<12x8x8xf32> -> vector<12x8x8xf32>
    "tpu.trace_stop"() : () -> ()
    %c0_6 = arith.constant 0 : index
    %c0_7 = arith.constant 0 : index
    %c0_8 = arith.constant 0 : index
    %8 = vector.load %arg3[%c0_6, %c0_7, %c0_8] : memref<12x1x8xf32, #tpu.memory_space<vmem>>, vector<12x1x8xf32>
    %9 = vector.broadcast %8 : vector<12x1x8xf32> to vector<12x8x8xf32>
    %10 = arith.addf %7, %9 : vector<12x8x8xf32>
    %11 = vector.extract_strided_slice %10 {offsets = [0, 0, 0], sizes = [4, 8, 8], strides = [1, 1, 1]} : vector<12x8x8xf32> to vector<4x8x8xf32>
    %12 = vector.extract_strided_slice %10 {offsets = [4, 0, 0], sizes = [4, 8, 8], strides = [1, 1, 1]} : vector<12x8x8xf32> to vector<4x8x8xf32>
    %13 = vector.extract_strided_slice %10 {offsets = [8, 0, 0], sizes = [4, 8, 8], strides = [1, 1, 1]} : vector<12x8x8xf32> to vector<4x8x8xf32>
    "tpu.trace_start"() <{level = 10 : i32, message = "hqd,hkd->hqk"}> : () -> ()
    %cst_9 = arith.constant dense<0.000000e+00> : vector<4x8x8xf32>
    %14 = tpu.matmul %11, %12, %cst_9 {dimension_numbers = #tpu.dot_dimension_numbers<[2], [2], [1], [1], [0, 0, 0, 1, 1, 1], [0], [0]>} : vector<4x8x8xf32>, vector<4x8x8xf32>, vector<4x8x8xf32> -> vector<4x8x8xf32>
    "tpu.trace_stop"() : () -> ()
    %cst_10 = arith.constant dense<0xFF800000> : vector<4x8xf32>
    %15 = vector.multi_reduction <maximumf>, %14, %cst_10 [2] : vector<4x8x8xf32> to vector<4x8xf32>
    %16 = vector.shape_cast %15 : vector<4x8xf32> to vector<4x8x1xf32>
    %17 = vector.broadcast %16 : vector<4x8x1xf32> to vector<4x8x8xf32>
    %18 = arith.subf %14, %17 : vector<4x8x8xf32>
    %19 = math.exp %18 : vector<4x8x8xf32>
    %cst_11 = arith.constant dense<0.000000e+00> : vector<4x8xf32>
    %20 = vector.multi_reduction <add>, %19, %cst_11 [2] : vector<4x8x8xf32> to vector<4x8xf32>
    %21 = vector.shape_cast %20 : vector<4x8xf32> to vector<4x8x1xf32>
    %22 = tpu.reciprocal %21 {approx = true} : vector<4x8x1xf32> -> vector<4x8x1xf32>
    %23 = vector.broadcast %22 : vector<4x8x1xf32> to vector<4x8x8xf32>
    %24 = arith.mulf %19, %23 : vector<4x8x8xf32>
    "tpu.trace_start"() <{level = 10 : i32, message = "hqk,hkd->hqd"}> : () -> ()
    %cst_12 = arith.constant dense<0.000000e+00> : vector<4x8x8xf32>
    %25 = tpu.matmul %24, %13, %cst_12 {dimension_numbers = #tpu.dot_dimension_numbers<[2], [1], [1], [2], [0, 0, 0, 1, 1, 2], [0], [0]>} : vector<4x8x8xf32>, vector<4x8x8xf32>, vector<4x8x8xf32> -> vector<4x8x8xf32>
    "tpu.trace_stop"() : () -> ()
    %c0_13 = arith.constant 0 : index
    %c0_14 = arith.constant 0 : index
    %c0_15 = arith.constant 0 : index
    %26 = vector.load %arg4[%c0_13, %c0_14, %c0_15] : memref<4x8x32xf32, #tpu.memory_space<vmem>>, vector<4x8x32xf32>
    "tpu.trace_start"() <{level = 10 : i32, message = "hsd,hdo->hso"}> : () -> ()
    %cst_16 = arith.constant dense<0.000000e+00> : vector<4x8x32xf32>
    %27 = tpu.matmul %25, %26, %cst_16 {dimension_numbers = #tpu.dot_dimension_numbers<[2], [1], [1], [2], [0, 0, 0, 1, 1, 2], [0], [0]>} : vector<4x8x8xf32>, vector<4x8x32xf32>, vector<4x8x32xf32> -> vector<4x8x32xf32>
    "tpu.trace_stop"() : () -> ()
    %cst_17 = arith.constant dense<0.000000e+00> : vector<8x32xf32>
    %28 = vector.multi_reduction <add>, %27, %cst_17 [0] : vector<4x8x32xf32> to vector<8x32xf32>
    %c0_18 = arith.constant 0 : index
    %c0_19 = arith.constant 0 : index
    %29 = vector.load %arg5[%c0_18, %c0_19] : memref<1x32xf32, #tpu.memory_space<vmem>>, vector<1x32xf32>
    %30 = vector.broadcast %29 : vector<1x32xf32> to vector<8x32xf32>
    %31 = arith.addf %28, %30 : vector<8x32xf32>
    %c0_20 = arith.constant 0 : index
    %c0_21 = arith.constant 0 : index
    %c0_22 = arith.constant 0 : index
    %32 = vector.load %arg6[%c0_20, %c0_21, %c0_22] : memref<1x8x32xf32, #tpu.memory_space<vmem>>, vector<1x8x32xf32>
    %33 = vector.shape_cast %32 : vector<1x8x32xf32> to vector<8x32xf32>
    %34 = vector.shape_cast %31 : vector<8x32xf32> to vector<1x8x32xf32>
    tpu.vector_store %arg6[%c0_20, %c0_21, %c0_22], %34 {strides = array<i32>} : memref<1x8x32xf32, #tpu.memory_space<vmem>>, vector<1x8x32xf32>,
    return
  }
  func.func @transform_0(%arg0: i32) -> (i32, i32, i32, i32) {
    %c0_i32 = arith.constant 0 : i32
    %c0_i32_0 = arith.constant 0 : i32
    %c0_i32_1 = arith.constant 0 : i32
    %c0_i32_2 = arith.constant 0 : i32
    return %arg0, %c0_i32, %c0_i32_0, %c0_i32_1 : i32, i32, i32, i32
  }
  func.func @transform_1(%arg0: i32) -> (i32, i32, i32) {
    %c0_i32 = arith.constant 0 : i32
    %c0_i32_0 = arith.constant 0 : i32
    %c0_i32_1 = arith.constant 0 : i32
    %c0_i32_2 = arith.constant 0 : i32
    return %c0_i32, %c0_i32_0, %c0_i32_1 : i32, i32, i32
  }
  func.func @transform_2(%arg0: i32) -> (i32, i32, i32) {
    %c0_i32 = arith.constant 0 : i32
    %c0_i32_0 = arith.constant 0 : i32
    %c0_i32_1 = arith.constant 0 : i32
    %c0_i32_2 = arith.constant 0 : i32
    return %c0_i32, %c0_i32_0, %c0_i32_1 : i32, i32, i32
  }
  func.func @transform_3(%arg0: i32) -> (i32, i32, i32) {
    %c0_i32 = arith.constant 0 : i32
    %c0_i32_0 = arith.constant 0 : i32
    %c0_i32_1 = arith.constant 0 : i32
    %c0_i32_2 = arith.constant 0 : i32
    return %c0_i32, %c0_i32_0, %c0_i32_1 : i32, i32, i32
  }
  func.func @transform_4(%arg0: i32) -> (i32, i32) {
    %c0_i32 = arith.constant 0 : i32
    %c0_i32_0 = arith.constant 0 : i32
    %c0_i32_1 = arith.constant 0 : i32
    return %c0_i32, %c0_i32_0 : i32, i32
  }
  func.func @transform_5(%arg0: i32) -> (i32, i32, i32) {
    %c0_i32 = arith.constant 0 : i32
    %c0_i32_0 = arith.constant 0 : i32
    %c0_i32_1 = arith.constant 0 : i32
    return %arg0, %c0_i32, %c0_i32_0 : i32, i32, i32
  }
}

</mosaic_0001>

<bundles_post_ra>
// kernel: tpu_custom_call.1
= control target key start
LH: loop header
LB: loop body
LE: loop exit
PB: predicated region body
PF: predicated region fallthrough
CT: control target
= control target key end

     0   :  { %10 = vsyncpa [#allocation3], 0  ;;  %s3153_s0 = inlined_call_operand.vmem [shape: f32[2,3,8,32], index: 0, kind: input, shape index: {}]   ;;  %s3154_s1 = inlined_call_operand.vmem [shape: f32[12,32,8], index: 1, kind: input, shape index: {}]   ;;  %s3155_s2 = inlined_call_operand.vmem [shape: f32[12,1,8], index: 2, kind: input, shape index: {}]   ;;  %s3156_s3 = inlined_call_operand.vmem [shape: f32[4,8,32], index: 3, kind: input, shape index: {}]   ;;  %s3157_s4 = inlined_call_operand.vmem [shape: f32[1,32], index: 4, kind: input, shape index: {}]   ;;  %s3158_s5 = inlined_call_operand.hbm [shape: f32[2,8,32], index: 5, kind: output, shape index: {}]  }
   0x1   :  { %12 = vsyncpa [#allocation3 + $0x1], 0  ;;  %s2714_s18 = smov 0   ;;  %s2716_s19 = smov 0  }
   0x2   :  { %s2718_s20 = smov 0   ;;  %s2720_s21 = smov 0  }
   0x3 LB: > { %s2735_s22 = sadd.s32 4294967295, %s2679_s21   ;;  %s2234_s23 = sadd.s32 4294967294, %s2679_s21   ;;  %s2679_s21 = sphi %s2720_s21, %s3164_s21   ;;  %s2675_s20 = sphi %s2718_s20, %s3163_s20   ;;  %s2671_s19 = sphi %s2716_s19, %s3162_s19   ;;  %s2667_s18 = sphi %s2714_s18, %s3161_s18  }
   0x4   : > { %s2739_s24 = sadd.s32 1, %s2679_s21   ;;  %s135_s25 = sadd.s32 1, %s2675_s20 }
   0x5   : > { %s132_s26 = ssub.s32 %s2679_s21, %s2739_s24  ;;  %p145_p0 = scmp.ne.s32.totalorder %s2675_s20, %s2671_s19 }
   0x6   : > { %p133_p1 = scmp.eq.s32.totalorder %s132_s26, 0  ;;  %p146_p2 = scmp.eq.s32.totalorder %s2735_s22, 1 }
   0x7   : > { %p151_p3 = scmp.ne.s32.totalorder %s2671_s19, %s2667_s18  ;;  %p152_p4 = scmp.eq.s32.totalorder %s2234_s23, 1 }
   0x8   : > { %s2750_s27 = scalar_select %p133_p1, %s2675_s20, %s135_s25  }
   0x9   : > { %p2752_p5 = por %p146_p2, %p145_p0  ;;  %p2756_p6 = por %p152_p4, %p151_p3 }
   0xa   : > { %p2237_p7 = scmp.ge.s32.totalorder %s2679_s21, 1  ;;  %p190_p8 = scmp.lt.s32.totalorder %s2679_s21, 3 }
   0xc   : > { %p191_p9 = pnand %p2237_p7, %p190_p8 }
   0xd   : > { %p218_p10 = scmp.lt.s32.totalorder (!%p191_p9), %s2735_s22, 1  ;;  %s215_s14 = sand.u32 (!%p191_p9), 1, %s2671_s19  }
   0xe   : > { %194 = sbr.rel (%p191_p9) target bundleno = 1170 (0x492), region = 40  ;;  %s2238_s15 = sshll.u32 (!%p191_p9), %s215_s14, 3 }
   0xf   : > { %s217_s25 = scalar_lea.vmem (!%p191_p9), [#allocation2], %s2238_s15  ;;  %s2162_s7 = scalar_lea.sflag (!%p191_p9), [#allocation3], %s215_s14 }
  0x10   : > { %s2175_s26 = sshll.u32 (!%p191_p9), %s217_s25, 4  ;;  %s2683_s10 = smov (!%p191_p9), [#allocation2]   ;;  %s2176_s26 = int_to_ptr.vmem [resolvable:$true] %s2175_s26 }
  0x11   : > { %s2619_s8 = scalar_lea.vmem (!%p191_p9), %s2176_s26, 128 }
  0x12   : > { %p2620_p11 = scmp.ne.s32.totalorder (!%p191_p9), %s2176_s26, %s2619_s8 }
  0x13   : > { %v229_v0 = vld [vmem:[%s3154_s1 + $0x18] sm:$0xff]  ;;  %v2681_v2 = vmov 0.0   ;;  %v228_v3 = vld [vmem:[%s3154_s1 + $0x10] sm:$0xff]  ;;  %s219_s13 = scalar_select %p218_p10, %s2735_s22, 1  ;;  %v227_v5 = vld [vmem:[%s3154_s1 + $0x8] sm:$0xff]  ;;  %vm358_vm0 = vcmask 261120  }
  0x14   : > { %v233_v1 = vld [vmem:[%s3154_s1 + $0x38] sm:$0xff]  ;;  %2369 = vmatprep.subr.mxu0 %v2681_v2  ;;  %2380 = vmatprep.subr.mxu1 %v2681_v2  ;;  %v232_v4 = vld [vmem:[%s3154_s1 + $0x30] sm:$0xff]  ;;  %v231_v6 = vld [vmem:[%s3154_s1 + $0x28] sm:$0xff]  ;;  %vm2682_vm1 = vmmov 0   ;;  %vm1208_vm2 = vcmask 64512   ;;  %p2621_p12 = pnand %p2620_p11, %p2752_p5 }
  0x15   : > { %2370 = vmatpush3.msra.mxu0 %v229_v0  ;;  %2381 = vmatpush3.msra.mxu1 %v233_v1  ;;  %s2561_s23 = smul.u32 24, %s219_s13  ;;  %v226_v7 = vld [vmem:[%s3154_s1] sm:$0xff]  ;;  %v237_v10 = vld [vmem:[%s3154_s1 + $0x58] sm:$0xff]  ;;  %v236_v12 = vld [vmem:[%s3154_s1 + $0x50] sm:$0xff] }
  0x16   : > { %2371 = vmatprep.subr.mxu0 %v2681_v2  ;;  %2382 = vmatprep.subr.mxu1 %v2681_v2  ;;  %v230_v8 = vld [vmem:[%s3154_s1 + $0x20] sm:$0xff]  ;;  %v241_v11 = vld [vmem:[%s3154_s1 + $0x78] sm:$0xff]  ;;  %v240_v13 = vld [vmem:[%s3154_s1 + $0x70] sm:$0xff]  ;;  %p2622_p13 = pneg %p2621_p12 }
  0x17   : > { %2372 = vmatpush3.msra.mxu0 %v228_v3  ;;  %2383 = vmatpush3.msra.mxu1 %v232_v4  ;;  %s2797_s9 = scalar_lea.vmem %s3153_s0, %s2561_s23  ;;  %v235_v14 = vld [vmem:[%s3154_s1 + $0x48] sm:$0xff]  ;;  %v234_v16 = vld [vmem:[%s3154_s1 + $0x40] sm:$0xff]  ;;  %v245_v18 = vld [vmem:[%s3154_s1 + $0x98] sm:$0xff]  ;;  %s2282_s23 = sshll.u32 %s2735_s22, 7 }
  0x18   : > { %2373 = vmatprep.subr.mxu0 %v2681_v2  ;;  %2384 = vmatprep.subr.mxu1 %v2681_v2  ;;  %v223_v9 = vld [vmem:[%s2797_s9] sm:$0xff]  ;;  %v239_v15 = vld [vmem:[%s3154_s1 + $0x68] sm:$0xff]  ;;  %v249_v19 = vld [vmem:[%s3154_s1 + $0xb8] sm:$0xff]  ;;  %s2173_s6 = scalar_lea.hbm %s3158_s5, %s2282_s23  ;;  %s2623_s22 = sshll.u32 %s2683_s10, 4  ;;  %s2624_s22 = int_to_ptr.vmem [resolvable:$false] %s2623_s22 }
  0x19   : > { %2374 = vmatpush3.msra.mxu0 %v227_v5  ;;  %2385 = vmatpush3.msra.mxu1 %v231_v6  ;;  %v238_v17 = vld [vmem:[%s3154_s1 + $0x60] sm:$0xff]  ;;  %v244_v20 = vld [vmem:[%s3154_s1 + $0x90] sm:$0xff]  ;;  %v243_v22 = vld [vmem:[%s3154_s1 + $0x88] sm:$0xff]  ;;  %s2625_s11 = scalar_lea.vmem %s2624_s22, 256  ;;  %p2626_p0 = scmp.lt.s32.totalorder %s2176_s26, %s2624_s22 }
  0x1a   : > { %2375 = vmatprep.subr.mxu0 %v2681_v2  ;;  %2386 = vmatprep.subr.mxu1 %v2681_v2  ;;  %v248_v21 = vld [vmem:[%s3154_s1 + $0xb0] sm:$0xff]  ;;  %v247_v23 = vld [vmem:[%s3154_s1 + $0xa8] sm:$0xff]  ;;  %v242_v24 = vld [vmem:[%s3154_s1 + $0x80] sm:$0xff]  ;;  %p2627_p1 = scmp.lt.s32.totalorder %s2625_s11, %s2619_s8 }
  0x1b   : > { %2376 = vmatpush3.msra.mxu0 %v226_v7  ;;  %2377 = vmatprep.mubr.msk.f32.mxu0 %vm2682_vm1, %v2681_v2  ;;  %v246_v25 = vld [vmem:[%s3154_s1 + $0xa0] sm:$0xff]  ;;  %v224_v26 = vld [vmem:[%s2797_s9 + $0x8] sm:$0xff]  ;;  %v253_v27 = vld [vmem:[%s3154_s1 + $0xd8] sm:$0xff] }
  0x1c   : > { %2387 = vmatpush3.msra.mxu1 %v230_v8  ;;  %2378 = vmatmul.mubr.msk.f32.vlgmr.msra.gmra.mxu0 %vm358_vm0, %v223_v9  ;;  %v257_v28 = vld [vmem:[%s3154_s1 + $0xf8] sm:$0xff]  ;;  %v252_v29 = vld [vmem:[%s3154_s1 + $0xd0] sm:$0xff]  ;;  %v251_v31 = vld [vmem:[%s3154_s1 + $0xc8] sm:$0xff]  ;;  %p2628_p2 = por %p2627_p1, %p2626_p0 }
  0x1d   : > { %2388 = vmatprep.mubr.msk.f32.mxu1 %vm2682_vm1, %v2681_v2  ;;  %2391 = vmatprep.subr.mxu0 %v2681_v2  ;;  %v256_v30 = vld [vmem:[%s3154_s1 + $0xf0] sm:$0xff]  ;;  %v255_v32 = vld [vmem:[%s3154_s1 + $0xe8] sm:$0xff]  ;;  %v250_v33 = vld [vmem:[%s3154_s1 + $0xc0] sm:$0xff] }
  0x1e   : > { %2402 = vmatprep.subr.mxu1 %v2681_v2  ;;  %2389 = vmatmul.mubr.msk.f32.vlgmr.msra.gmra.mxu1 %vm358_vm0, %v223_v9  ;;  %v254_v34 = vld [vmem:[%s3154_s1 + $0xe0] sm:$0xff]  ;;  %v261_v35 = vld [vmem:[%s3154_s1 + $0x118] sm:$0xff]  ;;  %v260_v37 = vld [vmem:[%s3154_s1 + $0x110] sm:$0xff]  ;;  %p2629_p3 = pnand %p2628_p2, %p2622_p13 }
  0x1f   : > { %2392 = vmatpush3.msra.mxu0 %v237_v10  ;;  %2403 = vmatpush3.msra.mxu1 %v241_v11  ;;  %v265_v36 = vld [vmem:[%s3154_s1 + $0x138] sm:$0xff]  ;;  %v264_v38 = vld [vmem:[%s3154_s1 + $0x130] sm:$0xff]  ;;  %v259_v39 = vld [vmem:[%s3154_s1 + $0x108] sm:$0xff] }
  0x20   : > { %2393 = vmatprep.subr.mxu0 %v2681_v2  ;;  %2404 = vmatprep.subr.mxu1 %v2681_v2  ;;  %v263_v40 = vld [vmem:[%s3154_s1 + $0x128] sm:$0xff]  ;;  %v258_v41 = vld [vmem:[%s3154_s1 + $0x100] sm:$0xff]  ;;  %v225_v43 = vld [vmem:[%s2797_s9 + $0x10] sm:$0xff] }
  0x21   : > { %2394 = vmatpush3.msra.mxu0 %v236_v12  ;;  %2405 = vmatpush3.msra.mxu1 %v240_v13  ;;  %v262_v42 = vld [vmem:[%s3154_s1 + $0x120] sm:$0xff]  ;;  %v269_v44 = vld [vmem:[%s3154_s1 + $0x158] sm:$0xff]  ;;  %v268_v46 = vld [vmem:[%s3154_s1 + $0x150] sm:$0xff] }
  0x22   : > { %2395 = vmatprep.subr.mxu0 %v2681_v2  ;;  %2406 = vmatprep.subr.mxu1 %v2681_v2  ;;  %v273_v45 = vld [vmem:[%s3154_s1 + $0x178] sm:$0xff]  ;;  %v272_v47 = vld [vmem:[%s3154_s1 + $0x170] sm:$0xff]  ;;  %v267_v48 = vld [vmem:[%s3154_s1 + $0x148] sm:$0xff] }
  0x23   : > { %2396 = vmatpush3.msra.mxu0 %v235_v14  ;;  %2407 = vmatpush3.msra.mxu1 %v239_v15  ;;  %v271_v49 = vld [vmem:[%s3154_s1 + $0x168] sm:$0xff]  ;;  %v266_v50 = vld [vmem:[%s3154_s1 + $0x140] sm:$0xff] }
  0x24   : > { %2397 = vmatprep.subr.mxu0 %v2681_v2  ;;  %2408 = vmatprep.subr.mxu1 %v2681_v2  ;;  %v270_v51 = vld [vmem:[%s3154_s1 + $0x160] sm:$0xff] }
  0x25   : > { %2398 = vmatpush3.msra.mxu0 %v234_v16  ;;  %2399 = vmatprep.mubr.msk.f32.mxu0 %vm2682_vm1, %v2681_v2  ;;  %v2244_v60 = vld [vmem:[%s3155_s2 + $0x4] ss:$0 sm:$0xff]  ;;  %v2245_v61 = vld [vmem:[%s3155_s2 + $0x5] ss:$0 sm:$0xff]  ;;  %v2240_v0 = vld [vmem:[%s3155_s2] ss:$0 sm:$0xff] }
  0x26   : > { %2409 = vmatpush3.msra.mxu1 %v238_v17  ;;  %2400 = vmatmul.mubr.msk.f32.vlgmr.msra.gmra.mxu0 %vm358_vm0, %v223_v9  ;;  %v2241_v1 = vld [vmem:[%s3155_s2 + $0x1] ss:$0 sm:$0xff]  ;;  %v2247_v10 = vld [vmem:[%s3155_s2 + $0x7] ss:$0 sm:$0xff]  ;;  %v2242_v13 = vld [vmem:[%s3155_s2 + $0x2] ss:$0 sm:$0xff] }
  0x27   : > { %2410 = vmatprep.mubr.msk.f32.mxu1 %vm2682_vm1, %v2681_v2  ;;  %2413 = vmatprep.subr.mxu0 %v2681_v2  ;;  %v2243_v14 = vld [vmem:[%s3155_s2 + $0x3] ss:$0 sm:$0xff] }
  0x28   : > { %2424 = vmatprep.subr.mxu1 %v2681_v2  ;;  %2411 = vmatmul.mubr.msk.f32.vlgmr.msra.gmra.mxu1 %vm358_vm0, %v223_v9  ;;  %v2246_v9 = vld [vmem:[%s3155_s2 + $0x6] ss:$0 sm:$0xff] }
  0x29   : > { %2414 = vmatpush3.msra.mxu0 %v245_v18  ;;  %2425 = vmatpush3.msra.mxu1 %v249_v19 }
  0x2a   : > { %2415 = vmatprep.subr.mxu0 %v2681_v2  ;;  %2426 = vmatprep.subr.mxu1 %v2681_v2 }
  0x2b   : > { %2416 = vmatpush3.msra.mxu0 %v244_v20  ;;  %2427 = vmatpush3.msra.mxu1 %v248_v21  ;;  %v2248_v21 = vld [vmem:[%s3155_s2 + $0x8] ss:$0 sm:$0xff] }
  0x2c   : > { %2417 = vmatprep.subr.mxu0 %v2681_v2  ;;  %2428 = vmatprep.subr.mxu1 %v2681_v2 }
  0x2d   : > { %2418 = vmatpush3.msra.mxu0 %v243_v22  ;;  %2429 = vmatpush3.msra.mxu1 %v247_v23  ;;  %v2249_v22 = vld [vmem:[%s3155_s2 + $0x9] ss:$0 sm:$0xff] }
  0x2e   : > { %2419 = vmatprep.subr.mxu0 %v2681_v2  ;;  %2430 = vmatprep.subr.mxu1 %v2681_v2 }
  0x2f   : > { %2420 = vmatpush3.msra.mxu0 %v242_v24  ;;  %2421 = vmatprep.mubr.msk.f32.mxu0 %vm2682_vm1, %v2681_v2 }
  0x30   : > { %2431 = vmatpush3.msra.mxu1 %v246_v25  ;;  %2432 = vmatprep.mubr.msk.f32.mxu1 %vm2682_vm1, %v2681_v2 }
  0x31   : > { %2422 = vmatmul.mubr.msk.f32.vlgmr.msra.gmra.mxu0 %vm358_vm0, %v224_v26  ;;  %2433 = vmatmul.mubr.msk.f32.vlgmr.msra.gmra.mxu1 %vm358_vm0, %v224_v26 }
  0x32   : > { %2435 = vmatprep.subr.mxu0 %v2681_v2  ;;  %2446 = vmatprep.subr.mxu1 %v2681_v2 }
  0x33   : > { %2436 = vmatpush3.msra.mxu0 %v253_v27  ;;  %2447 = vmatpush3.msra.mxu1 %v257_v28 }
  0x34   : > { %2437 = vmatprep.subr.mxu0 %v2681_v2  ;;  %2448 = vmatprep.subr.mxu1 %v2681_v2 }
  0x35   : > { %2438 = vmatpush3.msra.mxu0 %v252_v29  ;;  %2449 = vmatpush3.msra.mxu1 %v256_v30 }
  0x36   : > { %2439 = vmatprep.subr.mxu0 %v2681_v2  ;;  %2450 = vmatprep.subr.mxu1 %v2681_v2 }
  0x37   : > { %2440 = vmatpush3.msra.mxu0 %v251_v31  ;;  %2451 = vmatpush3.msra.mxu1 %v255_v32 }
  0x38   : > { %2441 = vmatprep.subr.mxu0 %v2681_v2  ;;  %2452 = vmatprep.subr.mxu1 %v2681_v2 }
  0x39   : > { %2442 = vmatpush3.msra.mxu0 %v250_v33  ;;  %2443 = vmatprep.mubr.msk.f32.mxu0 %vm2682_vm1, %v2681_v2 }
  0x3a   : > { %2453 = vmatpush3.msra.mxu1 %v254_v34  ;;  %2454 = vmatprep.mubr.msk.f32.mxu1 %vm2682_vm1, %v2681_v2 }
  0x3b   : > { %2444 = vmatmul.mubr.msk.f32.vlgmr.msra.gmra.mxu0 %vm358_vm0, %v224_v26  ;;  %2455 = vmatmul.mubr.msk.f32.vlgmr.msra.gmra.mxu1 %vm358_vm0, %v224_v26 }
  0x3c   : > { %2457 = vmatprep.subr.mxu0 %v2681_v2  ;;  %2468 = vmatprep.subr.mxu1 %v2681_v2 }
  0x3d   : > { %2465 = vmatprep.mubr.msk.f32.mxu0 %vm2682_vm1, %v2681_v2  ;;  %2476 = vmatprep.mubr.msk.f32.mxu1 %vm2682_vm1, %v2681_v2 }
  0x3e   : > { %2458 = vmatpush3.msra.mxu0 %v261_v35  ;;  %2469 = vmatpush3.msra.mxu1 %v265_v36 }
  0x3f   : > { %2459 = vmatprep.subr.mxu0 %v2681_v2  ;;  %2470 = vmatprep.subr.mxu1 %v2681_v2 }
  0x40   : > { %2460 = vmatpush3.msra.mxu0 %v260_v37  ;;  %2471 = vmatpush3.msra.mxu1 %v264_v38 }
  0x41   : > { %2461 = vmatprep.subr.mxu0 %v2681_v2  ;;  %2472 = vmatprep.subr.mxu1 %v2681_v2 }
  0x42   : > { %2462 = vmatpush3.msra.mxu0 %v259_v39  ;;  %2473 = vmatpush3.msra.mxu1 %v263_v40 }
  0x43   : > { %2463 = vmatprep.subr.mxu0 %v2681_v2  ;;  %2474 = vmatprep.subr.mxu1 %v2681_v2 }
  0x44   : > { %2464 = vmatpush3.msra.mxu0 %v258_v41  ;;  %2475 = vmatpush3.msra.mxu1 %v262_v42 }
  0x45   : > { %2479 = vmatprep.subr.mxu0 %v2681_v2  ;;  %2490 = vmatprep.subr.mxu1 %v2681_v2 }
  0x46   : > { %2466 = vmatmul.mubr.msk.f32.vlgmr.msra.gmra.mxu0 %vm358_vm0, %v225_v43  ;;  %2477 = vmatmul.mubr.msk.f32.vlgmr.msra.gmra.mxu1 %vm358_vm0, %v225_v43 }
  0x47   : > { %2480 = vmatpush3.msra.mxu0 %v269_v44  ;;  %2491 = vmatpush3.msra.mxu1 %v273_v45 }
  0x48   : > { %2481 = vmatprep.subr.mxu0 %v2681_v2  ;;  %2492 = vmatprep.subr.mxu1 %v2681_v2 }
  0x49   : > { %2482 = vmatpush3.msra.mxu0 %v268_v46  ;;  %2493 = vmatpush3.msra.mxu1 %v272_v47 }
  0x4a   : > { %2483 = vmatprep.subr.mxu0 %v2681_v2  ;;  %2494 = vmatprep.subr.mxu1 %v2681_v2 }
  0x4b   : > { %2484 = vmatpush3.msra.mxu0 %v267_v48  ;;  %2495 = vmatpush3.msra.mxu1 %v271_v49 }
  0x4c   : > { %2485 = vmatprep.subr.mxu0 %v2681_v2  ;;  %2496 = vmatprep.subr.mxu1 %v2681_v2 }
  0x4d   : > { %2487 = vmatprep.mubr.msk.f32.mxu0 %vm2682_vm1, %v2681_v2  ;;  %2498 = vmatprep.mubr.msk.f32.mxu1 %vm2682_vm1, %v2681_v2 }
  0x4e   : > { %2486 = vmatpush3.msra.mxu0 %v266_v50  ;;  %2497 = vmatpush3.msra.mxu1 %v270_v51 }
  0x4f   : > { %2488 = vmatmul.mubr.msk.f32.vlgmr.msra.gmra.mxu0 %vm358_vm0, %v225_v43  ;;  %2499 = vmatmul.mubr.msk.f32.vlgmr.msra.gmra.mxu1 %vm358_vm0, %v225_v43 }
  0x50   : > { %2501 = vmatprep.subr.mxu0 %v2681_v2  ;;  %2506 = vmatprep.subr.mxu1 %v2681_v2 }
  0x51   : > { %2503 = vmatprep.mubr.msk.f32.mxu0 %vm2682_vm1, %v2681_v2  ;;  %2508 = vmatprep.mubr.msk.f32.mxu1 %vm2682_vm1, %v2681_v2 }
  0xdc   : > { %v428_v52 = vpop.f32.mrf.mxu0 }
  0xdd   : > { %v429_v7 = vadd.f32 %v2240_v0, %v428_v52 }
  0xde   : > { %v2379_v53 = vpop.f32.mrf.mxu0  ;;  %v498_v54 = vpop.f32.mrf.mxu1 }
  0xdf   : > { %v499_v8 = vadd.f32 %v2241_v1, %v498_v54 }
  0xe0   : > { %v2390_v55 = vpop.f32.mrf.mxu1 }
  0xe6   : > { %v568_v56 = vpop.f32.mrf.mxu0 }
  0xe7   : > { %v569_v19 = vadd.f32 %v2242_v13, %v568_v56 }
  0xe8   : > { %v2401_v57 = vpop.f32.mrf.mxu0  ;;  %v638_v58 = vpop.f32.mrf.mxu1 }
  0xe9   : > { %v639_v20 = vadd.f32 %v2243_v14, %v638_v58 }
  0xea   : > { %v2412_v59 = vpop.f32.mrf.mxu1 }
  0xf1   : > { %v711_v62 = vpop.f32.mrf.mxu0  ;;  %v781_v63 = vpop.f32.mrf.mxu1 }
  0xf2   : > { %v712_v3 = vadd.f32 %v2244_v60, %v711_v62  ;;  %v782_v4 = vadd.f32 %v2245_v61, %v781_v63 }
  0xf3   : > { %v2423_v5 = vpop.f32.mrf.mxu0  ;;  %v2434_v6 = vpop.f32.mrf.mxu1 }
  0xf4   : > { %2502 = vmatpush3.xpose.msk.msra.mxu0 %vm1208_vm2, %v712_v3  ;;  %2507 = vmatpush3.xpose.msk.msra.mxu1 %vm1208_vm2, %v782_v4  ;;  %v2250_v5 = vld [vmem:[%s3155_s2 + $0xa] ss:$0 sm:$0xff] }
  0xf5   : > { %2511 = vmatprep.subr.mxu0 %v2681_v2  ;;  %2516 = vmatprep.subr.mxu1 %v2681_v2 }
  0xf7   : > { %2504 = vmatmul.mubr.msk.f32.vlgmr.msra.gmra.mxu0 %vm1208_vm2, %v429_v7  ;;  %2509 = vmatmul.mubr.msk.f32.vlgmr.msra.gmra.mxu1 %vm1208_vm2, %v499_v8 }
  0xf8   : > { %2513 = vmatprep.mubr.msk.f32.mxu0 %vm2682_vm1, %v2681_v2  ;;  %2518 = vmatprep.mubr.msk.f32.mxu1 %vm2682_vm1, %v2681_v2 }
  0xfb   : > { %v851_v11 = vpop.f32.mrf.mxu0  ;;  %v921_v12 = vpop.f32.mrf.mxu1 }
  0xfc   : > { %v852_v15 = vadd.f32 %v2246_v9, %v851_v11  ;;  %v922_v16 = vadd.f32 %v2247_v10, %v921_v12  ;;  %v2251_v10 = vld [vmem:[%s3155_s2 + $0xb] ss:$0 sm:$0xff] }
  0xfd   : > { %v2445_v17 = vpop.f32.mrf.mxu0  ;;  %v2456_v18 = vpop.f32.mrf.mxu1 }
  0xfe   : > { %2512 = vmatpush3.xpose.msk.msra.mxu0 %vm1208_vm2, %v852_v15  ;;  %2517 = vmatpush3.xpose.msk.msra.mxu1 %vm1208_vm2, %v922_v16  ;;  %v1849_v18 = vld [vmem:[%s3156_s3] sm:$0xff] }
  0xff   : > { %2521 = vmatprep.subr.mxu0 %v2681_v2  ;;  %2526 = vmatprep.subr.mxu1 %v2681_v2 }
 0x101   : > { %2514 = vmatmul.mubr.msk.f32.vlgmr.msra.gmra.mxu0 %vm1208_vm2, %v569_v19  ;;  %2519 = vmatmul.mubr.msk.f32.vlgmr.msra.gmra.mxu1 %vm1208_vm2, %v639_v20  ;;  %v1850_v19 = vld [vmem:[%s3156_s3 + $0x8] sm:$0xff]  ;;  %v1851_v20 = vld [vmem:[%s3156_s3 + $0x10] sm:$0xff] }
 0x102   : > { %2523 = vmatprep.mubr.msk.f32.mxu0 %vm2682_vm1, %v2681_v2  ;;  %2528 = vmatprep.mubr.msk.f32.mxu1 %vm2682_vm1, %v2681_v2 }
 0x106   : > { %v994_v23 = vpop.f32.mrf.mxu0  ;;  %v1064_v24 = vpop.f32.mrf.mxu1 }
 0x107   : > { %v995_v25 = vadd.f32 %v2248_v21, %v994_v23  ;;  %v1065_v26 = vadd.f32 %v2249_v22, %v1064_v24  ;;  %v1852_v23 = vld [vmem:[%s3156_s3 + $0x18] sm:$0xff] }
 0x108   : > { %v2467_v27 = vpop.f32.mrf.mxu0  ;;  %v2478_v28 = vpop.f32.mrf.mxu1 }
 0x109   : > { %2522 = vmatpush3.msra.mxu0 %v995_v25  ;;  %2527 = vmatpush3.msra.mxu1 %v1065_v26 }
 0x10a   : > { %2531 = vmatprep.subr.mxu0 %v2681_v2  ;;  %2536 = vmatprep.subr.mxu1 %v2681_v2 }
 0x10f   : > { %v1134_v29 = vpop.f32.mrf.mxu0  ;;  %v3058_v30 = vpop.f32.mrf.mxu1 }
 0x110   : > { %v1135_v9 = vadd.f32 %v2250_v5, %v1134_v29  ;;  %v1205_v13 = vadd.f32 %v2251_v10, %v3058_v30 }
 0x111   : > { %v2489_v31 = vpop.f32.mrf.mxu0  ;;  %v2500_v32 = vpop.f32.mrf.mxu1 }
 0x1b7   : > { %v1281_v33 = vpop.f32.mrf.mxu0  ;;  %v1357_v34 = vpop.f32.mrf.mxu1 }
 0x1b8   : > { %v1513_v35 = vsel %vm1208_vm2, %v1281_v33, -inf  ;;  %v1516_v38 = vsel %vm1208_vm2, %v1357_v34, -inf }
 0x1b9   : > { %v2510_v36 = vpop.f32.mrf.mxu1  ;;  %1514 = vmax.xlane.f32.xlu0 %v1513_v35  ;;  %v2505_v37 = vpop.f32.mrf.mxu0 }
 0x1bd   : > { %1517 = vmax.xlane.f32.xlu0 %v1516_v38 }
 0x1c1   : > { %v1433_v39 = vpop.f32.mrf.mxu0  ;;  %v1509_v40 = vpop.f32.mrf.mxu1 }
 0x1c2   : > { %v1519_v41 = vsel %vm1208_vm2, %v1433_v39, -inf  ;;  %v1522_v44 = vsel %vm1208_vm2, %v1509_v40, -inf }
 0x1c3   : > { %v2520_v42 = vpop.f32.mrf.mxu1  ;;  %1520 = vmax.xlane.f32.xlu1 %v1519_v41  ;;  %v2515_v43 = vpop.f32.mrf.mxu0 }
 0x1c4   : > { %v2280_v42 = vld [vmem:[%s3157_s4] ss:$0 sm:$0xff] }
 0x1c7   : > { %1523 = vmax.xlane.f32.xlu1 %v1522_v44 }
 0x242   : > { %v1515_v45 = vpop.xlane.xlu0 %1514 }
 0x243   : > { %v1525_v46 = vsub.f32 %v1281_v33, %v1515_v45 }
 0x245   : > { %v1529_v47 = vmul.f32 1.442695, %v1525_v46 }
 0x246   : > { %v1518_v48 = vpop.xlane.xlu0 %1517 }
 0x247   : > { %2603 = vpow2.f32 %v1529_v47  ;;  %v1526_v49 = vsub.f32 %v1357_v34, %v1518_v48 }
 0x249   : > { %v1531_v50 = vmul.f32 1.442695, %v1526_v49 }
 0x24b   : > { %2605 = vpow2.f32 %v1531_v50 }
 0x24c   : > { %v1521_v51 = vpop.xlane.xlu1 %1520 }
 0x24d   : > { %v1527_v52 = vsub.f32 %v1433_v39, %v1521_v51 }
 0x24f   : > { %v1533_v53 = vmul.f32 1.442695, %v1527_v52 }
 0x250   : > { %v1524_v54 = vpop.xlane.xlu1 %1523 }
 0x251   : > { %2607 = vpow2.f32 %v1533_v53  ;;  %v1528_v55 = vsub.f32 %v1509_v40, %v1524_v54 }
 0x253   : > { %v1535_v56 = vmul.f32 1.442695, %v1528_v55 }
 0x254   : > { %v2604_v57 = vpop.eup %2603 }
 0x255   : > { %2609 = vpow2.f32 %v1535_v56  ;;  %v1537_v58 = vsel %vm1208_vm2, %v2604_v57, 0.0 }
 0x256   : > { %1538 = vadd.xlane.f32.xlu0 %v1537_v58 }
 0x258   : > { %v2606_v59 = vpop.eup %2605 }
 0x259   : > { %v1540_v60 = vsel %vm1208_vm2, %v2606_v59, 0.0 }
 0x25a   : > { %1541 = vadd.xlane.f32.xlu1 %v1540_v60 }
 0x25e   : > { %v2608_v61 = vpop.eup %2607 }
 0x25f   : > { %v1543_v62 = vsel %vm1208_vm2, %v2608_v61, 0.0 }
 0x260   : > { %1544 = vadd.xlane.f32.xlu0 %v1543_v62 }
 0x262   : > { %v2610_v63 = vpop.eup %2609 }
 0x263   : > { %v1546_v0 = vsel %vm1208_vm2, %v2610_v63, 0.0 }
 0x264   : > { %1547 = vadd.xlane.f32.xlu1 %v1546_v0 }
 0x2df   : > { %v1539_v1 = vpop.xlane.xlu0 %1538 }
 0x2e0   : > { %2611 = vrcp.f32 %v1539_v1 }
 0x2e3   : > { %v1542_v3 = vpop.xlane.xlu1 %1541 }
 0x2e4   : > { %2613 = vrcp.f32 %v1542_v3 }
 0x2e9   : > { %v1545_v4 = vpop.xlane.xlu0 %1544 }
 0x2ea   : > { %2615 = vrcp.f32 %v1545_v4 }
 0x2ed   : > { %v2612_v6 = vpop.eup %2611  ;;  %v1548_v7 = vpop.xlane.xlu1 %1547 }
 0x2ee   : > { %2617 = vrcp.f32 %v1548_v7  ;;  %v1553_v8 = vmul.f32 %v2612_v6, %v2604_v57 }
 0x2f0   : > { %2524 = vmatmul.mubr.msk.f32.vlgmr.msra.gmra.mxu0 %vm1208_vm2, %v1553_v8 }
 0x2f1   : > { %v2614_v11 = vpop.eup %2613  ;;  %2532 = vmatpush3.msra.mxu0 %v1135_v9  ;;  %2533 = vmatprep.mubr.msk.f32.mxu0 %vm2682_vm1, %v2681_v2 }
 0x2f2   : > { %v1554_v12 = vmul.f32 %v2614_v11, %v2606_v59  ;;  %2541 = vmatprep.subr.mxu0 %v2681_v2 }
 0x2f4   : > { %2529 = vmatmul.mubr.msk.f32.vlgmr.msra.gmra.mxu1 %vm1208_vm2, %v1554_v12 }
 0x2f5   : > { %2537 = vmatpush3.msra.mxu1 %v1205_v13  ;;  %2538 = vmatprep.mubr.msk.f32.mxu1 %vm2682_vm1, %v2681_v2 }
 0x2f6   : > { %2546 = vmatprep.subr.mxu1 %v2681_v2 }
 0x2f7   : > { %v2616_v14 = vpop.eup %2615 }
 0x2f8   : > { %v1555_v15 = vmul.f32 %v2616_v14, %v2608_v61 }
 0x2fa   : > { %2534 = vmatmul.mubr.msk.f32.vlgmr.msra.gmra.mxu0 %vm1208_vm2, %v1555_v15 }
 0x2fb   : > { %v2618_v16 = vpop.eup %2617  ;;  %2543 = vmatprep.mubr.msk.f32.mxu0 %vm2682_vm1, %v2681_v2  ;;  %2542 = vmatpush3.msra.mxu0 %v1849_v18 }
 0x2fc   : > { %v1556_v17 = vmul.f32 %v2618_v16, %v2610_v63  ;;  %2551 = vmatprep.subr.mxu0 %v2681_v2 }
 0x2fe   : > { %2539 = vmatmul.mubr.msk.f32.vlgmr.msra.gmra.mxu1 %vm1208_vm2, %v1556_v17 }
 0x2ff   : > { %2548 = vmatprep.mubr.msk.f32.mxu1 %vm2682_vm1, %v2681_v2  ;;  %2547 = vmatpush3.msra.mxu1 %v1850_v19 }
 0x300   : > { %2556 = vmatprep.subr.mxu1 %v2681_v2 }
 0x3b0   : > { %v1626_v21 = vpop.f32.mrf.mxu0 }
 0x3b1   : > { %2544 = vmatmul.mubr.msk.f32.vlgmr.msra.gmra.mxu0 %vm1208_vm2, %v1626_v21 }
 0x3b2   : > { %v2525_v22 = vpop.f32.mrf.mxu0  ;;  %2552 = vmatpush3.msra.mxu0 %v1851_v20  ;;  %2553 = vmatprep.mubr.msk.f32.mxu0 %vm2682_vm1, %v2681_v2 }
 0x3b4   : > { %v1699_v24 = vpop.f32.mrf.mxu1 }
 0x3b5   : > { %2549 = vmatmul.mubr.msk.f32.vlgmr.msra.gmra.mxu1 %vm1208_vm2, %v1699_v24 }
 0x3b6   : > { %v2530_v25 = vpop.f32.mrf.mxu1  ;;  %2557 = vmatpush3.msra.mxu1 %v1852_v23  ;;  %2558 = vmatprep.mubr.msk.f32.mxu1 %vm2682_vm1, %v2681_v2 }
 0x3ba   : > { %v1772_v26 = vpop.f32.mrf.mxu0 }
 0x3bb   : > { %2554 = vmatmul.mubr.msk.f32.vlgmr.msra.gmra.mxu0 %vm1208_vm2, %v1772_v26 }
 0x3bc   : > { %v2535_v27 = vpop.f32.mrf.mxu0 }
 0x3be   : > { %v1845_v28 = vpop.f32.mrf.mxu1 }
 0x3bf   : > { %2559 = vmatmul.mubr.msk.f32.vlgmr.msra.gmra.mxu1 %vm1208_vm2, %v1845_v28 }
 0x3c0   : > { %v2540_v29 = vpop.f32.mrf.mxu1 }
 0x471   : > { %v1922_v30 = vpop.f32.mrf.mxu0 }
 0x472   : > { %v2145_v2 = vsel %vm358_vm0, %v1922_v30, 0.0 }
 0x473   : > { %v2545_v31 = vpop.f32.mrf.mxu0 }
 0x475   : > { %v1995_v32 = vpop.f32.mrf.mxu1 }
 0x476   : > { %v2146_v34 = vsel %vm358_vm0, %v1995_v32, 0.0 }
 0x477   : > { %v2550_v33 = vpop.f32.mrf.mxu1  ;;  %v2147_v37 = vadd.f32 %v2146_v34, %v2145_v2 }
 0x47b   : > { %v2068_v35 = vpop.f32.mrf.mxu0 }
 0x47c   : > { %v2148_v36 = vsel %vm358_vm0, %v2068_v35, 0.0 }
 0x47d   : > { %v2555_v38 = vpop.f32.mrf.mxu0  ;;  %v2149_v39 = vadd.f32 %v2148_v36, %v2147_v37 }
 0x47f   : > { %v2141_v40 = vpop.f32.mrf.mxu1 }
 0x480   : > { %v2150_v41 = vsel %vm358_vm0, %v2141_v40, 0.0 }
 0x481   : > { %v2151_v43 = vadd.f32 %v2150_v41, %v2149_v39  ;;  %v2560_v44 = vpop.f32.mrf.mxu1 }
 0x483   : > { %v2159_v45 = vadd.f32 %v2280_v42, %v2151_v43 }
 0x485   : > { %2160 = vst.msk [vmem:[%s217_s25] sm:$0xff] %vm358_vm0, %v2159_v45 }
 0x486   : > { %2632 = shalt.err (!%p2629_p3)
}
 0x487   : > { %s2633_s12 = scalar_lea.hbm %s2173_s6, 128  ;;  %s2637_s15 = scalar_lea.hbm %s3158_s5, 256 }
 0x488   : > { %p2634_p4 = scmp.ne.s32.totalorder %s2173_s6, %s2633_s12  ;;  %p2638_p9 = scmp.lt.s32.totalorder %s2173_s6, %s3158_s5 }
 0x489   : > { %p2639_p10 = scmp.lt.s32.totalorder %s2637_s15, %s2633_s12 }
 0x48a   : > { %p2635_p7 = pnand %p2634_p4, %p2752_p5 }
 0x48b   : > { %p2640_p11 = por %p2639_p10, %p2638_p9 }
 0x48c   : > { %p2636_p8 = pneg %p2635_p7 }
 0x48e   : > { %p2641_p12 = pnand %p2640_p11, %p2636_p8 }
 0x490   : > { %2644 = shalt.err (!%p2641_p12)
}
 0x491   : > { %2562 = dma.vmem_to_hbm [thread:$0]  (%p2752_p5), %s2176_s26, 128, %s2173_s6, %s2162_s7  }
 0x492 PF: > { %p2568_p13 = scmp.ge.s32.totalorder %s2679_s21, 2  ;;  %s2187_s23 = sand.u32 1, %s2667_s18  }
 0x493   : > { %s2188_s25 = scalar_lea.sflag [#allocation3], %s2187_s23 }
 0x494   : > { %p2565_p0 = pnand %p2568_p13, %p2756_p6 }
 0x496   : > { %p2566_p1 = pneg %p2565_p0 }
 0x498   : > { %2662 = dma.done.wait (%p2566_p1), %s2188_s25, 128  }
 0x499   : > { %2664 = vsyncadd (%p2566_p1), %s2188_s25, 4294967168  ;;  %p15_p2 = scmp.ge.s32.totalorder %s2739_s24, 4   ;;  %s3161_s18 = smov %s2671_s19 }
 0x49a   : > { %s3162_s19 = smov %s2675_s20  ;;  %s3163_s20 = smov %s2750_s27 }
 0x49b   : > { %s3164_s21 = smov %s2739_s24  ;;  %17 = sbr.rel (!%p15_p2) target bundleno = 3 (0x3), region = 75 }
 0x4a0   :  { %2193 = vsyncpa [#allocation3], 1 }
 0x4a1   :  { %2195 = vsyncpa [#allocation3 + $0x1], 1 }

</bundles_post_ra>
